<compile_context>
chip_gen: v5e
topology: v5e:2x2
jax: 0.10.0
libtpu: 0.0.40
codegen_flags: <defaults>
</compile_context>

<pallas_src>
import functools

import jax
import jax.numpy as jnp
from jax.experimental import pallas as pl
from jax.experimental.pallas import tpu as pltpu


_VMEM_TILE_BUDGET = 32 * 1024 * 1024   # budget for 2x(in)+2x(out) tile buffers
_VMEM_LIMIT = 48 * 1024 * 1024         # scoped VMEM limit (headroom on v7x's 64 MiB)


def _ln_kernel(x_ref, g_ref, b_ref, o_ref, *, eps):
    """Plain path: one logical row per tile row (features on the lane axis)."""
    x = x_ref[...].astype(jnp.float32)                         # (TM, F)
    f = x.shape[-1]
    mean = jnp.sum(x, axis=-1, keepdims=True) * jnp.float32(1.0 / f)
    d = x - mean
    var = jnp.sum(d * d, axis=-1, keepdims=True) * jnp.float32(1.0 / (f - 1))
    inv = pl.reciprocal(jnp.sqrt(var) + jnp.float32(eps), approx=False)   # (TM, 1)
    o_ref[...] = (g_ref[...] * (d * inv) + b_ref[...]).astype(o_ref.dtype)


def _ln_grouped_kernel(x_ref, seg_ref, g_ref, b_ref, o_ref, *, eps, feat):
    """Lane-dense path: `group` rows packed per 128-lane row; segmented
    mean/var via a block-diagonal 0/1 matmul (fp32 contraction on the MXU)."""
    x = x_ref[...].astype(jnp.float32)                         # (TM, W), W = G*F
    seg = seg_ref[...]                                         # (W, W) block-diag 0/1
    ssum = jnp.dot(x, seg, preferred_element_type=jnp.float32,
                   precision=jax.lax.Precision.HIGHEST)
    mean = ssum * jnp.float32(1.0 / feat)
    d = x - mean
    dsq = jnp.dot(d * d, seg, preferred_element_type=jnp.float32,
                  precision=jax.lax.Precision.HIGHEST)
    var = dsq * jnp.float32(1.0 / (feat - 1))
    inv = pl.reciprocal(jnp.sqrt(var) + jnp.float32(eps), approx=False)
    o_ref[...] = (g_ref[...] * (d * inv) + b_ref[...]).astype(o_ref.dtype)


def layer_norm(x, a_2, b_2, eps=1e-6, block_rows=4096):
    """x: (..., features). a_2, b_2: (features,). Returns same shape/dtype as x."""
    orig_shape = x.shape
    features = orig_shape[-1]
    if features < 2:
        raise ValueError("features must be >= 2 (unbiased std divides by F-1)")

    x2 = x.reshape(-1, features)
    rows = x2.shape[0]
    itemsize = max(jnp.dtype(x.dtype).itemsize, 4)   # budget tiles conservatively as f32

    compiler_params = pltpu.CompilerParams(
        dimension_semantics=("parallel",),
        vmem_limit_bytes=_VMEM_LIMIT,
    )
    cost = pl.CostEstimate(
        flops=8 * rows * features,
        transcendentals=2 * rows,
        bytes_accessed=2 * rows * features * jnp.dtype(x.dtype).itemsize,
    )

    # Hoist parameter casts out of the kernel.
    a32 = a_2.astype(jnp.float32).reshape(1, features)
    b32 = b_2.astype(jnp.float32).reshape(1, features)

    # Lane-dense grouping: pack `group` logical rows into one 128-lane row.
    group = 1
    if features < 128 and 128 % features == 0 and rows % (128 // features) == 0:
        group = 128 // features

    if group > 1:
        width = group * features              # == 128
        rows_g = rows // group
        xg = x2.reshape(rows_g, width)        # same bytes, lane-dense rows

        # Keep the MXU M dimension a multiple of 8 (pad tiny inputs only).
        rows_gp = rows_g
        if rows_g < 8:
            xg = jnp.pad(xg, ((0, 8 - rows_g), (0, 0)))
            rows_gp = 8

        cap = max(8, _VMEM_TILE_BUDGET // (4 * width * itemsize))
        tm = max(8, (min(block_rows, cap) // 8) * 8)
        if tm > rows_gp:
            tm = (rows_gp // 8) * 8
        grid = (pl.cdiv(rows_gp, tm),)

        # Block-diagonal 0/1 matrix: column j sums the segment containing j.
        idx = jnp.arange(width, dtype=jnp.int32) // features
        seg = (idx[:, None] == idx[None, :]).astype(jnp.float32)
        g_w = jnp.tile(a32, (1, group))       # (1, width): scale per packed column
        b_w = jnp.tile(b32, (1, group))

        out = pl.pallas_call(
            functools.partial(_ln_grouped_kernel, eps=eps, feat=features),
            out_shape=jax.ShapeDtypeStruct((rows_gp, width), x.dtype),
            grid_spec=pltpu.PrefetchScalarGridSpec(
                num_scalar_prefetch=0,
                grid=grid,
                in_specs=[
                    pl.BlockSpec((tm, width), lambda i: (i, 0)),
                    pl.BlockSpec((width, width), lambda i: (0, 0)),
                    pl.BlockSpec((1, width), lambda i: (0, 0)),
                    pl.BlockSpec((1, width), lambda i: (0, 0)),
                ],
                out_specs=pl.BlockSpec((tm, width), lambda i: (i, 0)),
            ),
            compiler_params=compiler_params,
            cost_estimate=cost,
        )(xg, seg, g_w, b_w)
        out = out[:rows_g].reshape(rows, features)
    else:
        cap = max(8, _VMEM_TILE_BUDGET // (4 * features * itemsize))
        tm = min(block_rows, cap)
        if tm >= rows:
            tm = rows                          # whole-array block
        else:
            tm = max(8, (tm // 8) * 8)
            if tm > rows:
                tm = rows
        grid = (pl.cdiv(rows, tm),)

        out = pl.pallas_call(
            functools.partial(_ln_kernel, eps=eps),
            out_shape=jax.ShapeDtypeStruct((rows, features), x.dtype),
            grid_spec=pltpu.PrefetchScalarGridSpec(
                num_scalar_prefetch=0,
                grid=grid,
                in_specs=[
                    pl.BlockSpec((tm, features), lambda i: (i, 0)),
                    pl.BlockSpec((1, features), lambda i: (0, 0)),
                    pl.BlockSpec((1, features), lambda i: (0, 0)),
                ],
                out_specs=pl.BlockSpec((tm, features), lambda i: (i, 0)),
            ),
            compiler_params=compiler_params,
            cost_estimate=cost,
        )(x2, a32, b32)

    return out.reshape(orig_shape)


def layer_norm_ref(x, a_2, b_2, eps=1e-6):
    # Pure-JAX reference matching the PyTorch forward exactly (unbiased std).
    mean = jnp.mean(x, axis=-1, keepdims=True)
    var = jnp.sum((x - mean) ** 2, axis=-1, keepdims=True) / (x.shape[-1] - 1)
    std = jnp.sqrt(var)
    return a_2 * (x - mean) / (std + eps) + b_2


if __name__ == "__main__":
    key = jax.random.PRNGKey(0)
    k1, k2, k3, k4, k5, k6 = jax.random.split(key, 6)
    eps = 1e-6

    # Case 1: module's natural small shape (batch=2, seq=8, hidden=32).
    # features=32 < 128 -> lane-dense grouped path (4 rows per 128-lane row).
    x1 = jax.random.normal(k1, (2, 8, 32), dtype=jnp.float32)
    a1 = 1.0 + 0.1 * jax.random.normal(k2, (32,), dtype=jnp.float32)
    b1 = 0.1 * jax.random.normal(k3, (32,), dtype=jnp.float32)
    y1 = jax.block_until_ready(layer_norm(x1, a1, b1, eps))
    assert y1.shape == x1.shape and y1.dtype == x1.dtype
    assert jnp.allclose(y1, layer_norm_ref(x1, a1, b1, eps), atol=1e-5, rtol=1e-5)

    # Case 2: features=128 (plain path), multi-step grid with a partial last block.
    x2 = jax.random.normal(k4, (2, 150, 128), dtype=jnp.float32)
    a2 = 0.5 + jax.random.uniform(k5, (128,), dtype=jnp.float32)
    b2 = 0.1 * jax.random.normal(k6, (128,), dtype=jnp.float32)
    y2 = jax.block_until_ready(layer_norm(x2, a2, b2, eps, block_rows=128))
    assert jnp.allclose(y2, layer_norm_ref(x2, a2, b2, eps), atol=1e-5, rtol=1e-5)

    # Case 3: features neither a multiple nor a divisor of 128 (plain path,
    # full-extent block) with the module's default ones/zeros parameters.
    x3 = jax.random.normal(k5, (4, 7, 96), dtype=jnp.float32)
    a3 = jnp.ones((96,), dtype=jnp.float32)
    b3 = jnp.zeros((96,), dtype=jnp.float32)
    y3 = jax.block_until_ready(layer_norm(x3, a3, b3, eps))
    assert jnp.allclose(y3, layer_norm_ref(x3, a3, b3, eps), atol=1e-5, rtol=1e-5)

    print("KERNEL_OK")
</pallas_src>

<mosaic_0001>
module attributes {stable_mosaic.version = 11 : i64} {
  func.func @_ln_grouped_kernel(%arg0: i32, %arg1: memref<8x128xf32, #tpu.memory_space<vmem>>, %arg2: memref<128x128xf32, #tpu.memory_space<vmem>>, %arg3: memref<1x128xf32, #tpu.memory_space<vmem>>, %arg4: memref<1x128xf32, #tpu.memory_space<vmem>>, %arg5: memref<8x128xf32, #tpu.memory_space<vmem>>) attributes {dimension_semantics = [#tpu.dimension_semantics<parallel>], iteration_bounds = array<i64: 1>, scalar_prefetch = 0 : i64, scratch_operands = 0 : i64, tpu.core_type = #tpu.core_type<tc>, window_params = [{transform_indices = @transform_0, window_bounds = array<i64: 8, 128>}, {pipeline_mode = #tpu.pipeline_mode<synchronous>, transform_indices = @transform_1, window_bounds = array<i64: 128, 128>}, {pipeline_mode = #tpu.pipeline_mode<synchronous>, transform_indices = @transform_2, window_bounds = array<i64: 1, 128>}, {pipeline_mode = #tpu.pipeline_mode<synchronous>, transform_indices = @transform_3, window_bounds = array<i64: 1, 128>}, {transform_indices = @transform_4, window_bounds = array<i64: 8, 128>}]} {
    %c0 = arith.constant 0 : index
    %c0_0 = arith.constant 0 : index
    %0 = vector.load %arg1[%c0, %c0_0] : memref<8x128xf32, #tpu.memory_space<vmem>>, vector<8x128xf32>
    %c0_1 = arith.constant 0 : index
    %c0_2 = arith.constant 0 : index
    %1 = vector.load %arg2[%c0_1, %c0_2] : memref<128x128xf32, #tpu.memory_space<vmem>>, vector<128x128xf32>
    %cst = arith.constant dense<0.000000e+00> : vector<8x128xf32>
    %2 = tpu.matmul %0, %1, %cst {dimension_numbers = #tpu.dot_dimension_numbers<[1], [0], [0], [1], [0, 0, 1, 1], [], []>, precision = #tpu.contract_precision<fp32>} : vector<8x128xf32>, vector<128x128xf32>, vector<8x128xf32> -> vector<8x128xf32>
    %cst_3 = arith.constant 3.125000e-02 : f32
    %3 = vector.broadcast %cst_3 : f32 to vector<8x128xf32>
    %4 = arith.mulf %2, %3 : vector<8x128xf32>
    %5 = arith.subf %0, %4 : vector<8x128xf32>
    %6 = arith.mulf %5, %5 : vector<8x128xf32>
    %cst_4 = arith.constant dense<0.000000e+00> : vector<8x128xf32>
    %7 = tpu.matmul %6, %1, %cst_4 {dimension_numbers = #tpu.dot_dimension_numbers<[1], [0], [0], [1], [0, 0, 1, 1], [], []>, precision = #tpu.contract_precision<fp32>} : vector<8x128xf32>, vector<128x128xf32>, vector<8x128xf32> -> vector<8x128xf32>
    %cst_5 = arith.constant 0.0322580636 : f32
    %8 = vector.broadcast %cst_5 : f32 to vector<8x128xf32>
    %9 = arith.mulf %7, %8 : vector<8x128xf32>
    %10 = math.sqrt %9 : vector<8x128xf32>
    %cst_6 = arith.constant 9.99999997E-7 : f32
    %11 = vector.broadcast %cst_6 : f32 to vector<8x128xf32>
    %12 = arith.addf %10, %11 : vector<8x128xf32>
    %13 = tpu.reciprocal %12 : vector<8x128xf32> -> vector<8x128xf32>
    %c0_7 = arith.constant 0 : index
    %c0_8 = arith.constant 0 : index
    %14 = vector.load %arg3[%c0_7, %c0_8] : memref<1x128xf32, #tpu.memory_space<vmem>>, vector<1x128xf32>
    %15 = arith.mulf %5, %13 : vector<8x128xf32>
    %16 = vector.broadcast %14 : vector<1x128xf32> to vector<8x128xf32>
    %17 = arith.mulf %16, %15 : vector<8x128xf32>
    %c0_9 = arith.constant 0 : index
    %c0_10 = arith.constant 0 : index
    %18 = vector.load %arg4[%c0_9, %c0_10] : memref<1x128xf32, #tpu.memory_space<vmem>>, vector<1x128xf32>
    %19 = vector.broadcast %18 : vector<1x128xf32> to vector<8x128xf32>
    %20 = arith.addf %17, %19 : vector<8x128xf32>
    %c0_11 = arith.constant 0 : index
    %c0_12 = arith.constant 0 : index
    %21 = vector.load %arg5[%c0_11, %c0_12] : memref<8x128xf32, #tpu.memory_space<vmem>>, vector<8x128xf32>
    tpu.vector_store %arg5[%c0_11, %c0_12], %20 {strides = array<i32>} : memref<8x128xf32, #tpu.memory_space<vmem>>, vector<8x128xf32>,
    return
  }
  func.func @transform_0(%arg0: i32) -> (i32, i32) {
    %c0_i32 = arith.constant 0 : i32
    %c0_i32_0 = arith.constant 0 : i32
    return %arg0, %c0_i32 : i32, i32
  }
  func.func @transform_1(%arg0: i32) -> (i32, i32) {
    %c0_i32 = arith.constant 0 : i32
    %c0_i32_0 = arith.constant 0 : i32
    %c0_i32_1 = arith.constant 0 : i32
    return %c0_i32, %c0_i32_0 : i32, i32
  }
  func.func @transform_2(%arg0: i32) -> (i32, i32) {
    %c0_i32 = arith.constant 0 : i32
    %c0_i32_0 = arith.constant 0 : i32
    %c0_i32_1 = arith.constant 0 : i32
    return %c0_i32, %c0_i32_0 : i32, i32
  }
  func.func @transform_3(%arg0: i32) -> (i32, i32) {
    %c0_i32 = arith.constant 0 : i32
    %c0_i32_0 = arith.constant 0 : i32
    %c0_i32_1 = arith.constant 0 : i32
    return %c0_i32, %c0_i32_0 : i32, i32
  }
  func.func @transform_4(%arg0: i32) -> (i32, i32) {
    %c0_i32 = arith.constant 0 : i32
    %c0_i32_0 = arith.constant 0 : i32
    return %arg0, %c0_i32 : i32, i32
  }
}

</mosaic_0001>

<bundles_post_ra>
// kernel: tpu_custom_call.1
= control target key start
LH: loop header
LB: loop body
LE: loop exit
PB: predicated region body
PF: predicated region fallthrough
CT: control target
= control target key end

     0   :  { %9 = vsyncpa [#allocation3], 0  ;;  %s1337_s0 = inlined_call_operand.hbm [shape: f32[8,128], index: 0, kind: input, shape index: {}]   ;;  %s1338_s1 = inlined_call_operand.hbm [shape: f32[128,128], index: 1, kind: input, shape index: {}]   ;;  %s1339_s2 = inlined_call_operand.vmem [shape: f32[1,128], index: 2, kind: input, shape index: {}]   ;;  %s1340_s3 = inlined_call_operand.vmem [shape: f32[1,128], index: 3, kind: input, shape index: {}]   ;;  %s1341_s4 = inlined_call_operand.hbm [shape: f32[8,128], index: 4, kind: output, shape index: {}]  }
   0x1   :  { %10 = vsyncpa [#allocation6], 0 }
   0x2   :  { %11 = vsyncpa [#allocation4], 0  ;;  %s17_s17 = sshll.u32 %s1337_s0, 4  ;;  %s897_s18 = smov [#allocation2]   ;;  %s18_s17 = int_to_ptr.hbm [resolvable:$true] %s17_s17 }
   0x3   :  { %s19_s19 = sshll.u32 %s897_s18, 4  ;;  %s27_s22 = sshll.u32 %s1338_s1, 4  ;;  %s20_s19 = int_to_ptr.vmem [resolvable:$true] %s19_s19  ;;  %s28_s22 = int_to_ptr.hbm [resolvable:$true] %s27_s22 }
   0x4   :  { %22 = dma.hbm_to_vmem [thread:$0]  %s18_s17, 128, %s20_s19, [#allocation3]  }
   0x5   :  { %s898_s23 = smov [#allocation5]   ;;  %s899_s25 = smov 128  }
   0x6   :  { %s29_s24 = sshll.u32 %s898_s23, 4  ;;  %s900_s26 = smov 8   ;;  %s30_s24 = int_to_ptr.vmem [resolvable:$true] %s29_s24 }
   0x7   :  { %35 = dma.hbm_to_vmem [thread:$0]  %s28_s22, 2048, %s30_s24, [#allocation6], %s899_s25, %s899_s25, %s900_s26  }
   0x8   :  { %891 = dma.done.wait [#allocation3], 128  }
   0x9   :  { %892 = vsyncadd [#allocation3], 4294967168 }
   0xa   :  { %893 = dma.done.wait [#allocation6], 2048  }
   0xb   :  { %894 = vsyncadd [#allocation6], 4294965248  ;;  %v64_v0 = vld [vmem:[#allocation5 + $0x78] sm:$0xff]  ;;  %v63_v1 = vld [vmem:[#allocation5 + $0x70] sm:$0xff]  ;;  %s901_s29 = smov [#allocation7]   ;;  %s797_s7 = sshll.u32 %s1341_s4, 4  ;;  %s798_s7 = int_to_ptr.hbm [resolvable:$true] %s797_s7 }
   0xc   :  { %v62_v2 = vld [vmem:[#allocation5 + $0x68] sm:$0xff]  ;;  %v933_v3 = vand.u32 4294901760, %v64_v0  ;;  %v935_v4 = vand.u32 4294901760, %v63_v1  ;;  %v61_v6 = vld [vmem:[#allocation5 + $0x60] sm:$0xff]  ;;  %v60_v7 = vld [vmem:[#allocation5 + $0x58] sm:$0xff]  ;;  %s795_s30 = sshll.u32 %s901_s29, 4  ;;  %s796_s30 = int_to_ptr.vmem [resolvable:$true] %s795_s30 }
   0xd   :  { %v937_v5 = vand.u32 4294901760, %v62_v2  ;;  %v59_v8 = vld [vmem:[#allocation5 + $0x50] sm:$0xff]  ;;  %v939_v9 = vand.u32 4294901760, %v61_v6  ;;  %v941_v10 = vand.u32 4294901760, %v60_v7  ;;  %v58_v12 = vld [vmem:[#allocation5 + $0x48] sm:$0xff]  ;;  %v57_v13 = vld [vmem:[#allocation5 + $0x40] sm:$0xff] }
   0xe   :  { %v943_v11 = vand.u32 4294901760, %v59_v8  ;;  %66 = vmatpush.msra.mxu0 %v933_v3  ;;  %v947_v14 = vsub.f32 %v64_v0, %v933_v3  ;;  %v950_v15 = vsub.f32 %v63_v1, %v935_v4  ;;  %v955_v17 = vand.u32 4294901760, %v58_v12  ;;  %v56_v18 = vld [vmem:[#allocation5 + $0x38] sm:$0xff]  ;;  %262 = vmatpush.msra.mxu3 %v933_v3  ;;  %v55_v26 = vld [vmem:[#allocation5 + $0x30] sm:$0xff]  ;;  %v54_v36 = vld [vmem:[#allocation5 + $0x28] sm:$0xff] }
   0xf   :  { %v953_v16 = vsub.f32 %v62_v2, %v937_v5  ;;  %v959_v19 = vsub.f32 %v61_v6, %v939_v9  ;;  %v962_v20 = vsub.f32 %v60_v7, %v941_v10  ;;  %v977_v25 = vand.u32 4294901760, %v57_v13  ;;  %v53_v42 = vld [vmem:[#allocation5 + $0x20] sm:$0xff]  ;;  %v52_v47 = vld [vmem:[#allocation5 + $0x18] sm:$0xff]  ;;  %v51_v55 = vld [vmem:[#allocation5 + $0x10] sm:$0xff] }
  0x10   :  { %v965_v21 = vsub.f32 %v59_v8, %v943_v11  ;;  %68 = vmatpush.msra.mxu0 %v935_v4  ;;  %v969_v22 = vand.u32 4294901760, %v947_v14  ;;  %v972_v23 = vand.u32 4294901760, %v950_v15  ;;  %209 = vmatpush.msra.mxu2 %v947_v14  ;;  %v983_v28 = vand.u32 4294901760, %v56_v18  ;;  %v50_v60 = vld [vmem:[#allocation5 + $0x8] sm:$0xff]  ;;  %v49_v1 = vld [vmem:[#allocation5] sm:$0xff]  ;;  %v1087_v7 = vld [vmem:[#allocation2] sm:$0xff] }
  0x11   :  { %v975_v24 = vand.u32 4294901760, %v953_v16  ;;  %v981_v27 = vand.u32 4294901760, %v959_v19  ;;  %v986_v29 = vsub.f32 %v58_v12, %v955_v17  ;;  %264 = vmatpush.msra.mxu3 %v935_v4  ;;  %v997_v33 = vand.u32 4294901760, %v962_v20  ;;  %1356 = vst [vmem:[#allocation17_spill] sm:$0xff] %v1087_v7 }
  0x12   :  { %70 = vmatpush.msra.mxu0 %v937_v5  ;;  %v109_v30 = vsub.f32 %v947_v14, %v969_v22  ;;  %v115_v31 = vsub.f32 %v950_v15, %v972_v23  ;;  %212 = vmatpush.msra.mxu2 %v950_v15  ;;  %v1001_v34 = vand.u32 4294901760, %v965_v21  ;;  %v1003_v35 = vand.u32 4294901760, %v55_v26 }
  0x13   :  { %v121_v32 = vsub.f32 %v953_v16, %v975_v24  ;;  %266 = vmatpush.msra.mxu3 %v937_v5  ;;  %v127_v39 = vsub.f32 %v959_v19, %v981_v27  ;;  %v1014_v40 = vsub.f32 %v57_v13, %v977_v25  ;;  %v1018_v41 = vand.u32 4294901760, %v986_v29 }
  0x14   :  { %v1006_v37 = vand.u32 4294901760, %v109_v30  ;;  %72 = vmatpush.msra.mxu0 %v939_v9  ;;  %v1009_v38 = vand.u32 4294901760, %v115_v31  ;;  %215 = vmatpush.msra.mxu2 %v953_v16  ;;  %v133_v44 = vsub.f32 %v962_v20, %v997_v33  ;;  %v1027_v45 = vand.u32 4294901760, %v54_v36 }
  0x15   :  { %1350 = vst [vmem:[#allocation11_spill] sm:$0xff] %v1014_v40  ;;  %268 = vmatpush.msra.mxu3 %v939_v9  ;;  %v1023_v43 = vand.u32 4294901760, %v121_v32  ;;  %v1030_v46 = vsub.f32 %v56_v18, %v983_v28  ;;  %v139_v48 = vsub.f32 %v965_v21, %v1001_v34  ;;  %v1038_v49 = vand.u32 4294901760, %v127_v39 }
  0x16   :  { %111 = vmatpush.msra.mxu1 %v1006_v37  ;;  %74 = vmatpush.msra.mxu0 %v941_v10  ;;  %v1041_v50 = vand.u32 4294901760, %v1014_v40  ;;  %v1043_v51 = vand.u32 4294901760, %v53_v42  ;;  %v1046_v52 = vsub.f32 %v55_v26, %v1003_v35  ;;  %v145_v53 = vsub.f32 %v986_v29, %v1018_v41 }
  0x17   :  { %1351 = vst [vmem:[#allocation12_spill] sm:$0xff] %v1030_v46  ;;  %218 = vmatpush.msra.mxu2 %v959_v19  ;;  %270 = vmatpush.msra.mxu3 %v941_v10  ;;  %v1050_v54 = vand.u32 4294901760, %v52_v47  ;;  %v1056_v56 = vand.u32 4294901760, %v133_v44  ;;  %v1059_v57 = vand.u32 4294901760, %v1030_v46  ;;  %v1062_v58 = vsub.f32 %v54_v36, %v1027_v45 }
  0x18   :  { %117 = vmatpush.msra.mxu1 %v1009_v38  ;;  %76 = vmatpush.msra.mxu0 %v943_v11  ;;  %1352 = vst [vmem:[#allocation13_spill] sm:$0xff] %v1046_v52  ;;  %v1064_v59 = vand.u32 4294901760, %v139_v48  ;;  %v151_v61 = vsub.f32 %v1014_v40, %v1041_v50  ;;  %v1073_v62 = vand.u32 4294901760, %v1046_v52  ;;  %v1075_v63 = vand.u32 4294901760, %v51_v55 }
  0x19   :  { %221 = vmatpush.msra.mxu2 %v962_v20  ;;  %272 = vmatpush.msra.mxu3 %v943_v11  ;;  %1353 = vst [vmem:[#allocation14_spill] sm:$0xff] %v1062_v58  ;;  %v1078_v0 = vsub.f32 %v53_v42, %v1043_v51  ;;  %v1080_v2 = vand.u32 4294901760, %v145_v53  ;;  %v1083_v6 = vsub.f32 %v52_v47, %v1050_v54  ;;  %v1094_v12 = vand.u32 4294901760, %v1062_v58 }
  0x1a   :  { %123 = vmatpush.msra.mxu1 %v1023_v43  ;;  %78 = vmatpush.msra.mxu0 %v955_v17  ;;  %v157_v8 = vsub.f32 %v1030_v46, %v1059_v57  ;;  %v1096_v13 = vand.u32 4294901760, %v50_v60  ;;  %v1099_v18 = vand.u32 4294901760, %v1087_v7  ;;  %v1101_v26 = vand.u32 4294901760, %v49_v1 }
  0x1b   :  { %224 = vmatpush.msra.mxu2 %v965_v21  ;;  %274 = vmatpush.msra.mxu3 %v955_v17  ;;  %1354 = vst [vmem:[#allocation15_spill] sm:$0xff] %v1078_v0  ;;  %v1107_v30 = vand.u32 4294901760, %v151_v61  ;;  %v163_v31 = vsub.f32 %v1046_v52, %v1073_v62  ;;  %v1112_v32 = vand.u32 4294901760, %v1078_v0  ;;  %v1115_v36 = vsub.f32 %v51_v55, %v1075_v63 }
  0x1c   :  { %129 = vmatpush.msra.mxu1 %v1038_v49  ;;  %80 = vmatpush.msra.mxu0 %v977_v25  ;;  %1355 = vst [vmem:[#allocation16_spill] sm:$0xff] %v1083_v6  ;;  %v1118_v39 = vand.u32 4294901760, %v1083_v6  ;;  %v1124_v42 = vand.u32 4294901760, %v157_v8  ;;  %v169_v44 = vsub.f32 %v1062_v58, %v1094_v12  ;;  %v1129_v47 = vsub.f32 %v50_v60, %v1096_v13 }
  0x1d   :  { %227 = vmatpush.msra.mxu2 %v986_v29  ;;  %276 = vmatpush.msra.mxu3 %v977_v25  ;;  %1357 = vst [vmem:[#allocation18_spill] sm:$0xff] %v1115_v36  ;;  %v98_v48 = vsub.f32 %v1087_v7, %v1099_v18  ;;  %v1137_v53 = vand.u32 4294901760, %v163_v31  ;;  %v175_v55 = vsub.f32 %v1078_v0, %v1112_v32  ;;  %v1142_v61 = vand.u32 4294901760, %v1115_v36 }
  0x1e   :  { %135 = vmatpush.msra.mxu1 %v1056_v56  ;;  %82 = vmatpush.msra.mxu0 %v983_v28  ;;  %v1145_v60 = vsub.f32 %v49_v1, %v1101_v26  ;;  %v1151_v8 = vand.u32 4294901760, %v169_v44  ;;  %v181_v31 = vsub.f32 %v1083_v6, %v1118_v39  ;;  %v1156_v7 = vand.u32 4294901760, %v1129_v47 }
  0x1f   :  { %230 = vmatpush.msra.mxu2 %v1014_v40  ;;  %278 = vmatpush.msra.mxu3 %v983_v28  ;;  %v1162_v1 = vand.u32 4294901760, %v175_v55  ;;  %v187_v44 = vsub.f32 %v1115_v36, %v1142_v61 }
  0x20   :  { %141 = vmatpush.msra.mxu1 %v1064_v59  ;;  %84 = vmatpush.msra.mxu0 %v1003_v35  ;;  %v193_v55 = vsub.f32 %v1129_v47, %v1156_v7 }
  0x21   :  { %233 = vmatpush.msra.mxu2 %v1030_v46  ;;  %280 = vmatpush.msra.mxu3 %v1003_v35 }
  0x22   :  { %147 = vmatpush.msra.mxu1 %v1080_v2  ;;  %86 = vmatpush.msra.mxu0 %v1027_v45 }
  0x23   :  { %236 = vmatpush.msra.mxu2 %v1046_v52  ;;  %282 = vmatpush.msra.mxu3 %v1027_v45  ;;  %v99_v52 = vand.u32 4294901760, %v98_v48 }
  0x24   :  { %153 = vmatpush.msra.mxu1 %v1107_v30  ;;  %88 = vmatpush.msra.mxu0 %v1043_v51 }
  0x25   :  { %239 = vmatpush.msra.mxu2 %v1062_v58  ;;  %284 = vmatpush.msra.mxu3 %v1043_v51  ;;  %v1167_v58 = vand.u32 4294901760, %v1145_v60  ;;  %v100_v46 = vsub.f32 %v98_v48, %v99_v52 }
  0x26   :  { %159 = vmatpush.msra.mxu1 %v1124_v42  ;;  %90 = vmatpush.msra.mxu0 %v1050_v54 }
  0x27   :  { %242 = vmatpush.msra.mxu2 %v1078_v0  ;;  %286 = vmatpush.msra.mxu3 %v1050_v54  ;;  %v1173_v0 = vand.u32 4294901760, %v181_v31  ;;  %v199_v40 = vsub.f32 %v1145_v60, %v1167_v58  ;;  %v1188_v31 = vand.u32 4294901760, %v193_v55 }
  0x28   :  { %165 = vmatpush.msra.mxu1 %v1137_v53  ;;  %92 = vmatpush.msra.mxu0 %v1075_v63 }
  0x29   :  { %245 = vmatpush.msra.mxu2 %v1083_v6  ;;  %288 = vmatpush.msra.mxu3 %v1075_v63  ;;  %v1181_v6 = vand.u32 4294901760, %v187_v44  ;;  %v1194_v44 = vand.u32 4294901760, %v199_v40 }
  0x2a   :  { %171 = vmatpush.msra.mxu1 %v1151_v8  ;;  %94 = vmatpush.msra.mxu0 %v1096_v13 }
  0x2b   :  { %248 = vmatpush.msra.mxu2 %v1115_v36  ;;  %290 = vmatpush.msra.mxu3 %v1096_v13  ;;  %v101_v36 = vand.u32 4294901760, %v100_v46 }
  0x2c   :  { %177 = vmatpush.msra.mxu1 %v1162_v1  ;;  %96 = vmatpush.msra.mxu0 %v1101_v26 }
  0x2d   :  { %251 = vmatpush.msra.mxu2 %v1129_v47  ;;  %292 = vmatpush.msra.mxu3 %v1101_v26 }
  0x2e   :  { %303 = vmatpush.msrb.mxu0 %v969_v22  ;;  %183 = vmatpush.msra.mxu1 %v1173_v0 }
  0x2f   :  { %254 = vmatpush.msra.mxu2 %v1145_v60  ;;  %296 = vmatmul.f32.vlgmr.msra.gmra.mxu3 %v99_v52 }
  0x30   :  { %307 = vmatpush.msrb.mxu0 %v972_v23  ;;  %189 = vmatpush.msra.mxu1 %v1181_v6 }
  0x31   :  { %257 = vmatmul.f32.vlgmr.msra.gmra.mxu2 %v98_v48  ;;  %102 = vmatmul.f32.vlgmr.msra.gmra.mxu0 %v101_v36 }
  0x32   :  { %311 = vmatpush.msrb.mxu0 %v975_v24  ;;  %195 = vmatpush.msra.mxu1 %v1188_v31 }
  0x33   :  { %455 = vmatpush.msrb.mxu3 %v1006_v37  ;;  %410 = vmatpush.msrb.mxu2 %v933_v3 }
  0x34   :  { %315 = vmatpush.msrb.mxu0 %v981_v27  ;;  %201 = vmatpush.msra.mxu1 %v1194_v44 }
  0x35   :  { %203 = vmatmul.f32.vlgmr.msra.gmra.mxu1 %v1099_v18  ;;  %461 = vmatpush.msrb.mxu3 %v1009_v38 }
  0x36   :  { %370 = vmatpush.msrb.mxu1 %v933_v3  ;;  %319 = vmatpush.msrb.mxu0 %v997_v33 }
  0x37   :  { %467 = vmatpush.msrb.mxu3 %v1023_v43  ;;  %412 = vmatpush.msrb.mxu2 %v935_v4 }
  0x38   :  { %372 = vmatpush.msrb.mxu1 %v935_v4  ;;  %323 = vmatpush.msrb.mxu0 %v1001_v34 }
  0x39   :  { %473 = vmatpush.msrb.mxu3 %v1038_v49  ;;  %414 = vmatpush.msrb.mxu2 %v937_v5 }
  0x3a   :  { %374 = vmatpush.msrb.mxu1 %v937_v5  ;;  %327 = vmatpush.msrb.mxu0 %v1018_v41 }
  0x3b   :  { %479 = vmatpush.msrb.mxu3 %v1056_v56  ;;  %416 = vmatpush.msrb.mxu2 %v939_v9 }
  0x3c   :  { %376 = vmatpush.msrb.mxu1 %v939_v9  ;;  %331 = vmatpush.msrb.mxu0 %v1041_v50 }
  0x3d   :  { %485 = vmatpush.msrb.mxu3 %v1064_v59  ;;  %418 = vmatpush.msrb.mxu2 %v941_v10 }
  0x3e   :  { %378 = vmatpush.msrb.mxu1 %v941_v10  ;;  %335 = vmatpush.msrb.mxu0 %v1059_v57 }
  0x3f   :  { %491 = vmatpush.msrb.mxu3 %v1080_v2  ;;  %420 = vmatpush.msrb.mxu2 %v943_v11 }
  0x40   :  { %380 = vmatpush.msrb.mxu1 %v943_v11  ;;  %339 = vmatpush.msrb.mxu0 %v1073_v62 }
  0x41   :  { %497 = vmatpush.msrb.mxu3 %v1107_v30  ;;  %422 = vmatpush.msrb.mxu2 %v955_v17 }
  0x42   :  { %382 = vmatpush.msrb.mxu1 %v955_v17  ;;  %343 = vmatpush.msrb.mxu0 %v1094_v12 }
  0x43   :  { %503 = vmatpush.msrb.mxu3 %v1124_v42  ;;  %424 = vmatpush.msrb.mxu2 %v977_v25 }
  0x44   :  { %384 = vmatpush.msrb.mxu1 %v977_v25  ;;  %347 = vmatpush.msrb.mxu0 %v1112_v32 }
  0x45   :  { %509 = vmatpush.msrb.mxu3 %v1137_v53  ;;  %426 = vmatpush.msrb.mxu2 %v983_v28 }
  0x46   :  { %386 = vmatpush.msrb.mxu1 %v983_v28  ;;  %351 = vmatpush.msrb.mxu0 %v1118_v39 }
  0x47   :  { %515 = vmatpush.msrb.mxu3 %v1151_v8  ;;  %428 = vmatpush.msrb.mxu2 %v1003_v35  ;;  %v813_v8 = vld [vmem:[%s1339_s2] ss:$0 sm:$0xff] }
  0x48   :  { %388 = vmatpush.msrb.mxu1 %v1003_v35  ;;  %355 = vmatpush.msrb.mxu0 %v1142_v61 }
  0x49   :  { %521 = vmatpush.msrb.mxu3 %v1162_v1  ;;  %430 = vmatpush.msrb.mxu2 %v1027_v45 }
  0x4a   :  { %390 = vmatpush.msrb.mxu1 %v1027_v45  ;;  %359 = vmatpush.msrb.mxu0 %v1156_v7 }
  0x4b   :  { %527 = vmatpush.msrb.mxu3 %v1173_v0  ;;  %432 = vmatpush.msrb.mxu2 %v1043_v51 }
  0x4c   :  { %392 = vmatpush.msrb.mxu1 %v1043_v51  ;;  %363 = vmatpush.msrb.mxu0 %v1167_v58 }
  0x4d   :  { %365 = vmatmul.f32.vlgmr.msrb.gmra.mxu0 %v1099_v18  ;;  %533 = vmatpush.msrb.mxu3 %v1181_v6 }
  0x4e   :  { %394 = vmatpush.msrb.mxu1 %v1050_v54  ;;  %553 = vmatpush.msra.mxu0 %v947_v14  ;;  %v1364_v14 = vld [vmem:[#allocation18_spill] sm:$0xff] }
  0x4f   :  { %539 = vmatpush.msrb.mxu3 %v1188_v31  ;;  %434 = vmatpush.msrb.mxu2 %v1050_v54  ;;  %v814_v31 = vld [vmem:[%s1340_s3] ss:$0 sm:$0xff] }
  0x50   :  { %396 = vmatpush.msrb.mxu1 %v1075_v63  ;;  %556 = vmatpush.msra.mxu0 %v950_v15 }
  0x51   :  { %545 = vmatpush.msrb.mxu3 %v1194_v44  ;;  %436 = vmatpush.msrb.mxu2 %v1075_v63 }
  0x52   :  { %398 = vmatpush.msrb.mxu1 %v1096_v13  ;;  %559 = vmatpush.msra.mxu0 %v953_v16 }
  0x53   :  { %714 = vmatpush.msra.mxu3 %v933_v3  ;;  %438 = vmatpush.msrb.mxu2 %v1096_v13 }
  0x54   :  { %400 = vmatpush.msrb.mxu1 %v1101_v26  ;;  %562 = vmatpush.msra.mxu0 %v959_v19 }
  0x55   :  { %402 = vmatmul.f32.vlgmr.msrb.gmra.mxu1 %v1099_v18  ;;  %716 = vmatpush.msra.mxu3 %v935_v4 }
  0x56   :  { %606 = vmatpush.msra.mxu1 %v933_v3  ;;  %565 = vmatpush.msra.mxu0 %v962_v20  ;;  %v1358_v3 = vld [vmem:[#allocation11_spill] sm:$0xff] }
  0x57   :  { %718 = vmatpush.msra.mxu3 %v937_v5  ;;  %440 = vmatpush.msrb.mxu2 %v1101_v26 }
  0x58   :  { %608 = vmatpush.msra.mxu1 %v935_v4  ;;  %568 = vmatpush.msra.mxu0 %v965_v21  ;;  %v1359_v4 = vld [vmem:[#allocation12_spill] sm:$0xff] }
  0x59   :  { %720 = vmatpush.msra.mxu3 %v939_v9  ;;  %647 = vmatpush.msra.mxu2 %v969_v22 }
  0x5a   :  { %610 = vmatpush.msra.mxu1 %v937_v5  ;;  %571 = vmatpush.msra.mxu0 %v986_v29  ;;  %v1360_v5 = vld [vmem:[#allocation13_spill] sm:$0xff] }
  0x5b   :  { %722 = vmatpush.msra.mxu3 %v941_v10  ;;  %651 = vmatpush.msra.mxu2 %v972_v23  ;;  %v1365_v29 = vld [vmem:[#allocation17_spill] sm:$0xff] }
  0x5c   :  { %612 = vmatpush.msra.mxu1 %v939_v9  ;;  %574 = vmatpush.msra.mxu0 %v1358_v3  ;;  %v1361_v9 = vld [vmem:[#allocation14_spill] sm:$0xff] }
  0x5d   :  { %724 = vmatpush.msra.mxu3 %v943_v11  ;;  %655 = vmatpush.msra.mxu2 %v975_v24 }
  0x5e   :  { %614 = vmatpush.msra.mxu1 %v941_v10  ;;  %577 = vmatpush.msra.mxu0 %v1359_v4  ;;  %v1362_v10 = vld [vmem:[#allocation15_spill] sm:$0xff] }
  0x5f   :  { %726 = vmatpush.msra.mxu3 %v955_v17  ;;  %659 = vmatpush.msra.mxu2 %v981_v27 }
  0x60   :  { %616 = vmatpush.msra.mxu1 %v943_v11  ;;  %580 = vmatpush.msra.mxu0 %v1360_v5  ;;  %v1363_v11 = vld [vmem:[#allocation16_spill] sm:$0xff] }
  0x61   :  { %728 = vmatpush.msra.mxu3 %v977_v25  ;;  %663 = vmatpush.msra.mxu2 %v997_v33 }
  0x62   :  { %618 = vmatpush.msra.mxu1 %v955_v17  ;;  %583 = vmatpush.msra.mxu0 %v1361_v9 }
  0x63   :  { %730 = vmatpush.msra.mxu3 %v983_v28  ;;  %667 = vmatpush.msra.mxu2 %v1001_v34 }
  0x64   :  { %620 = vmatpush.msra.mxu1 %v977_v25  ;;  %586 = vmatpush.msra.mxu0 %v1362_v10 }
  0x65   :  { %732 = vmatpush.msra.mxu3 %v1003_v35  ;;  %671 = vmatpush.msra.mxu2 %v1018_v41 }
  0x66   :  { %622 = vmatpush.msra.mxu1 %v983_v28  ;;  %589 = vmatpush.msra.mxu0 %v1363_v11 }
  0x67   :  { %734 = vmatpush.msra.mxu3 %v1027_v45  ;;  %675 = vmatpush.msra.mxu2 %v1041_v50 }
  0x68   :  { %624 = vmatpush.msra.mxu1 %v1003_v35  ;;  %592 = vmatpush.msra.mxu0 %v1364_v14 }
  0x69   :  { %736 = vmatpush.msra.mxu3 %v1043_v51  ;;  %679 = vmatpush.msra.mxu2 %v1059_v57 }
  0x6a   :  { %626 = vmatpush.msra.mxu1 %v1027_v45  ;;  %595 = vmatpush.msra.mxu0 %v1129_v47 }
  0x6b   :  { %738 = vmatpush.msra.mxu3 %v1050_v54  ;;  %683 = vmatpush.msra.mxu2 %v1073_v62 }
  0x6c   :  { %628 = vmatpush.msra.mxu1 %v1043_v51  ;;  %598 = vmatpush.msra.mxu0 %v1145_v60 }
  0x6d   :  { %740 = vmatpush.msra.mxu3 %v1075_v63  ;;  %687 = vmatpush.msra.mxu2 %v1094_v12 }
  0x6e   :  { %630 = vmatpush.msra.mxu1 %v1050_v54 }
  0x6f   :  { %742 = vmatpush.msra.mxu3 %v1096_v13  ;;  %691 = vmatpush.msra.mxu2 %v1112_v32 }
  0x70   :  { %632 = vmatpush.msra.mxu1 %v1075_v63 }
  0x71   :  { %744 = vmatpush.msra.mxu3 %v1101_v26  ;;  %695 = vmatpush.msra.mxu2 %v1118_v39 }
  0x72   :  { %634 = vmatpush.msra.mxu1 %v1096_v13 }
  0x73   :  { %699 = vmatpush.msra.mxu2 %v1142_v61 }
  0x74   :  { %636 = vmatpush.msra.mxu1 %v1101_v26 }
  0x75   :  { %703 = vmatpush.msra.mxu2 %v1156_v7 }
  0x77   :  { %707 = vmatpush.msra.mxu2 %v1167_v58 }
  0xae   :  { %v103_v16 = vpop.f32.mrf.mxu0 }
  0xb2   :  { %v204_v15 = vpop.f32.mrf.mxu1  ;;  %v297_v21 = vpop.f32.mrf.mxu3 }
  0xb3   :  { %v205_v17 = vadd.f32 %v204_v15, %v103_v16 }
  0xb4   :  { %v258_v19 = vpop.f32.mrf.mxu2 }
  0xb5   :  { %v259_v20 = vadd.f32 %v258_v19, %v205_v17 }
  0xb7   :  { %v298_v22 = vadd.f32 %v297_v21, %v259_v20 }
  0xca   :  { %v366_v23 = vpop.f32.mrf.mxu0 }
  0xcb   :  { %v367_v24 = vadd.f32 %v366_v23, %v298_v22 }
  0xd2   :  { %v403_v25 = vpop.f32.mrf.mxu1 }
  0xd3   :  { %v404_v27 = vadd.f32 %v403_v25, %v367_v24 }
  0xd5   :  { %v406_v28 = vmul.f32 0.03125, %v404_v27 }
  0xd7   :  { %v407_v33 = vsub.f32 %v1365_v29, %v406_v28 }
  0xd9   :  { %v408_v34 = vmul.f32 %v407_v33, %v407_v33 }
  0xdb   :  { %v441_v35 = vand.u32 4294901760, %v408_v34 }
  0xdd   :  { %v442_v37 = vsub.f32 %v408_v34, %v441_v35  ;;  %547 = vmatmul.f32.vlgmr.msrb.gmra.mxu3 %v441_v35 }
  0xdf   :  { %601 = vmatmul.f32.vlgmr.msra.gmra.mxu0 %v442_v37  ;;  %v443_v38 = vand.u32 4294901760, %v442_v37 }
  0xe1   :  { %640 = vmatmul.f32.vlgmr.msra.gmra.mxu1 %v443_v38  ;;  %v444_v40 = vsub.f32 %v442_v37, %v443_v38 }
  0xe3   :  { %v445_v41 = vand.u32 4294901760, %v444_v40 }
  0xe5   :  { %446 = vmatmul.f32.vlgmr.msrb.gmra.mxu2 %v445_v41  ;;  %746 = vmatmul.f32.vlgmr.msra.gmra.mxu3 %v441_v35 }
  0xed   :  { %709 = vmatmul.f32.vlgmr.msra.gmra.mxu2 %v441_v35 }
 0x15c   :  { %v602_v49 = vpop.f32.mrf.mxu0 }
 0x15e   :  { %v641_v51 = vpop.f32.mrf.mxu1 }
 0x160   :  { %v548_v43 = vpop.f32.mrf.mxu3 }
 0x168   :  { %v447_v45 = vpop.f32.mrf.mxu2  ;;  %v747_v57 = vpop.f32.mrf.mxu3 }
 0x169   :  { %v549_v46 = vadd.f32 %v548_v43, %v447_v45 }
 0x16b   :  { %v603_v50 = vadd.f32 %v602_v49, %v549_v46 }
 0x16d   :  { %v642_v52 = vadd.f32 %v641_v51, %v603_v50 }
 0x170   :  { %v710_v54 = vpop.f32.mrf.mxu2 }
 0x171   :  { %v711_v56 = vadd.f32 %v710_v54, %v642_v52 }
 0x173   :  { %v748_v58 = vadd.f32 %v747_v57, %v711_v56 }
 0x175   :  { %v750_v59 = vmul.f32 0.032258064, %v748_v58 }
 0x177   :  { %815 = vrsqrt.f32 %v750_v59  ;;  %vm758_vm0 = vcmp.eq.f32.partialorder %v750_v59, inf  ;;  %v761_v13 = vand.u32 2147483648, %v750_v59  ;;  %vm760_vm1 = vcmp.eq.f32.partialorder %v750_v59, 0.0 }
 0x17d   :  { %v816_v62 = vpop.eup %815 }
 0x17e   :  { %v752_v63 = vmul.f32 %v816_v62, %v750_v59 }
 0x180   :  { %v753_v0 = vmul.f32 %v816_v62, %v752_v63 }
 0x182   :  { %v754_v2 = vmul.f32 0.5, %v753_v0 }
 0x184   :  { %v755_v6 = vsub.f32 1.5, %v754_v2 }
 0x186   :  { %v756_v7 = vmul.f32 %v816_v62, %v755_v6 }
 0x188   :  { %v757_v12 = vmul.f32 %v756_v7, %v750_v59 }
 0x18a   :  { %v759_v18 = vsel %vm758_vm0, %v750_v59, %v757_v12 }
 0x18b   :  { %v762_v26 = vsel %vm760_vm1, %v761_v13, %v759_v18 }
 0x18c   :  { %v763_v30 = vadd.f32 1e-06, %v762_v26 }
 0x18e   :  { %817 = vrcp.f32 %v763_v30  ;;  %v775_v42 = vand.u32 2147483648, %v763_v30  ;;  %v773_v48 = vand.u32 2147483647, %v763_v30  ;;  %vm769_vm3 = vweird.f32 %v763_v30 }
 0x190   :  { %v776_v61 = vor.u32 1.1754944e-38, %v775_v42  ;;  %vm774_vm5 = vcmp.eq.f32.partialorder %v773_v48, 8.507059e+37 }
 0x194   :  { %v818_v32 = vpop.eup %817 }
 0x195   :  { %v765_v36 = vmul.f32 %v818_v32, %v763_v30  ;;  %vm770_vm2 = vweird.f32 %v818_v32 }
 0x196   :  { %vm771_vm4 = vmor %vm769_vm3, %vm770_vm2 }
 0x197   :  { %v766_v39 = vsub.f32 1.0, %v765_v36 }
 0x199   :  { %v767_v47 = vmul.f32 %v818_v32, %v766_v39 }
 0x19b   :  { %v768_v53 = vadd.f32 %v818_v32, %v767_v47 }
 0x19d   :  { %v772_v60 = vsel %vm771_vm4, %v818_v32, %v768_v53 }
 0x19e   :  { %v777_v1 = vsel %vm774_vm5, %v776_v61, %v772_v60 }
 0x19f   :  { %v779_v55 = vmul.f32 %v777_v1, %v407_v33 }
 0x1a1   :  { %v783_v44 = vmul.f32 %v813_v8, %v779_v55 }
 0x1a3   :  { %v788_v3 = vadd.f32 %v814_v31, %v783_v44 }
 0x1a5   :  { %789 = vst [vmem:[#allocation7] sm:$0xff] %v788_v3 }
 0x1a6   :  { %800 = dma.vmem_to_hbm [thread:$0]  %s796_s30, 128, %s798_s7, [#allocation4]  }
 0x1a7   :  { %895 = dma.done.wait [#allocation4], 128  }
 0x1a8   :  { %896 = vsyncadd [#allocation4], 4294967168 }
 0x1a9   :  { %805 = vsyncpa [#allocation3], 1 }
 0x1aa   :  { %806 = vsyncpa [#allocation6], 1 }
 0x1ab   :  { %807 = vsyncpa [#allocation4], 1 }

</bundles_post_ra>
